<compile_context>
chip_gen: v7x
topology: tpu7x:2x2x1
jax: 0.10.0
libtpu: 0.0.40
codegen_flags: <defaults>
</compile_context>

<pallas_src>
import functools
import math

import jax
import jax.numpy as jnp
from jax import lax
from jax.experimental import pallas as pl
from jax.experimental.pallas import tpu as pltpu

NUM_PARTICLES = 20
PARTICLE_FEAT_DIM = 6
GLOBAL_FEAT_DIM = 5
EMB_DIM = 64
HID1 = 256
HID2 = 128
OUTPUT_DIM = NUM_PARTICLES * PARTICLE_FEAT_DIM + GLOBAL_FEAT_DIM  # 125
OUTPUT_DIM_PADDED = 128  # lane-aligned padded output width


def _round_up(x, m):
    return ((x + m - 1) // m) * m


def _default_act_dtype():
    """bf16 elementwise (bias-add + GELU) only on chips with a bf16 VPU/EUP."""
    try:
        kind = jax.devices()[0].device_kind.lower()
    except Exception:
        return jnp.float32
    if "v6" in kind or "v7" in kind:
        return jnp.bfloat16
    return jnp.float32  # v5e & older: no bf16 VPU/EUP — keep f32 elementwise


def _gelu(x, approximate):
    if approximate:
        # tanh form -> EUP slot (otherwise idle); ~1e-3 off PyTorch exact erf.
        return jax.nn.gelu(x, approximate=True)
    xf = x.astype(jnp.float32)
    y = 0.5 * xf * (1.0 + lax.erf(xf * (1.0 / math.sqrt(2.0))))
    return y.astype(x.dtype)


def ae_decoder_kernel(emb_ref, w1_ref, b1_ref, w2_ref, b2_ref, w3_ref, b3_ref,
                      out_ref, *, act_dtype, approx_gelu):
    act_is_bf16 = jnp.dtype(act_dtype) == jnp.dtype(jnp.bfloat16)

    def bias_gelu(h_f32, b_ref):
        if act_is_bf16:
            # v6e/v7x: bf16 bias-add + GELU (packed vregs, bf16 EUP); output is
            # already bf16 for the next MXU matmul.
            h = h_f32.astype(jnp.bfloat16) + b_ref[...].astype(jnp.bfloat16)
            return _gelu(h, approx_gelu)
        # v5e path: f32 elementwise, single downcast for the next matmul.
        h = _gelu(h_f32 + b_ref[...], approx_gelu)
        return h.astype(jnp.bfloat16)

    # Layer 1: Linear(64 -> 256) + GELU.  bf16 MXU inputs, f32 accumulation.
    h = jnp.dot(emb_ref[...], w1_ref[...], preferred_element_type=jnp.float32)
    h = bias_gelu(h, b1_ref)
    # Layer 2: Linear(256 -> 128) + GELU.
    h = jnp.dot(h, w2_ref[...], preferred_element_type=jnp.float32)
    h = bias_gelu(h, b2_ref)
    # Layer 3: Linear(128 -> 128-padded output), bias added in f32.
    out = jnp.dot(h, w3_ref[...], preferred_element_type=jnp.float32) + b3_ref[...]
    out_ref[...] = out.astype(out_ref.dtype)


def prepare_params(params):
    """One-time prep: bf16 weights, (1, D) f32 biases, pad layer-3 to 128 cols."""
    w1, b1, w2, b2, w3, b3 = params
    w3_p = jnp.zeros((HID2, OUTPUT_DIM_PADDED), jnp.float32).at[:, :OUTPUT_DIM].set(w3)
    b3_p = jnp.zeros((1, OUTPUT_DIM_PADDED), jnp.float32).at[:, :OUTPUT_DIM].set(
        b3.reshape(1, -1))
    return (
        w1.astype(jnp.bfloat16), b1.reshape(1, -1).astype(jnp.float32),
        w2.astype(jnp.bfloat16), b2.reshape(1, -1).astype(jnp.float32),
        w3_p.astype(jnp.bfloat16), b3_p,
    )


@functools.partial(jax.jit,
                   static_argnames=("tb", "out_dtype", "act_dtype", "approx_gelu"))
def ae_decoder_forward_flat(emb, prepared, tb=2048, out_dtype=jnp.float32,
                            act_dtype=None, approx_gelu=True):
    """Fused decoder; returns the raw lane-dense padded (B_pad, 128) buffer.

    Rows [:B] / cols [:OUTPUT_DIM] are valid.  Use this entry point when the
    consumer can index the padded buffer directly — it avoids the extra
    slice+reshape copy done by ae_decoder_forward.
    """
    if act_dtype is None:
        act_dtype = _default_act_dtype()
    B = emb.shape[0]
    w1, b1, w2, b2, w3, b3 = prepared

    # Batch tile: large enough to amortize the ~0.35 us per-step overhead,
    # multiple of 8, and capped at ceil(B/2) so big batches always produce
    # >= 2 grid steps (v7x 2-TC sharding via the "parallel" axis).
    TB = min(tb, _round_up(max((B + 1) // 2, 1), 8))
    B_pad = _round_up(B, TB)
    num_blocks = B_pad // TB

    # Halve the input DMA (callers should ideally pass bf16 directly).
    emb = emb.astype(jnp.bfloat16)
    if B_pad != B:
        emb = jnp.pad(emb, ((0, B_pad - B), (0, 0)))

    weight_spec = lambda shape: pl.BlockSpec(shape, lambda i: (0, 0))

    out_bytes = B_pad * OUTPUT_DIM_PADDED * jnp.dtype(out_dtype).itemsize
    param_bytes = (w1.size + w2.size + w3.size) * 2 + (b1.size + b2.size + b3.size) * 4
    cost = pl.CostEstimate(
        flops=2 * B_pad * (EMB_DIM * HID1 + HID1 * HID2 + HID2 * OUTPUT_DIM_PADDED),
        transcendentals=B_pad * (HID1 + HID2),
        bytes_accessed=emb.size * 2 + param_bytes + out_bytes,
    )

    kernel = functools.partial(ae_decoder_kernel, act_dtype=act_dtype,
                               approx_gelu=approx_gelu)
    return pl.pallas_call(
        kernel,
        out_shape=jax.ShapeDtypeStruct((B_pad, OUTPUT_DIM_PADDED), out_dtype),
        grid=(num_blocks,),
        in_specs=[
            pl.BlockSpec((TB, EMB_DIM), lambda i: (i, 0)),
            weight_spec((EMB_DIM, HID1)),
            weight_spec((1, HID1)),
            weight_spec((HID1, HID2)),
            weight_spec((1, HID2)),
            weight_spec((HID2, OUTPUT_DIM_PADDED)),
            weight_spec((1, OUTPUT_DIM_PADDED)),
        ],
        out_specs=pl.BlockSpec((TB, OUTPUT_DIM_PADDED), lambda i: (i, 0)),
        compiler_params=pltpu.CompilerParams(
            dimension_semantics=("parallel",),
            vmem_limit_bytes=32 * 1024 * 1024),
        cost_estimate=cost,
    )(emb, w1, b1, w2, b2, w3, b3)


@functools.partial(jax.jit,
                   static_argnames=("tb", "out_dtype", "act_dtype", "approx_gelu"))
def ae_decoder_forward(emb, prepared, tb=2048, out_dtype=jnp.float32,
                       act_dtype=None, approx_gelu=True):
    """PyTorch-parity API: (particles (B,20,6), global_feats (B,5)).

    Note: the trailing slice + reshape materializes one ~B*125 copy; use
    ae_decoder_forward_flat downstream if that matters.
    """
    B = emb.shape[0]
    out = ae_decoder_forward_flat(emb, prepared, tb=tb, out_dtype=out_dtype,
                                  act_dtype=act_dtype, approx_gelu=approx_gelu)
    out = out[:B, :OUTPUT_DIM]
    particles = out[:, :NUM_PARTICLES * PARTICLE_FEAT_DIM].reshape(
        -1, NUM_PARTICLES, PARTICLE_FEAT_DIM)
    global_feats = out[:, NUM_PARTICLES * PARTICLE_FEAT_DIM:]
    return particles, global_feats


def init_params(key):
    """Deterministic init matching nn.Linear shapes (kaiming-uniform-ish)."""
    ks = jax.random.split(key, 6)

    def linear(kw, kb, fan_in, fan_out):
        bound = 1.0 / math.sqrt(fan_in)
        w = jax.random.uniform(kw, (fan_in, fan_out), jnp.float32, -bound, bound)
        b = jax.random.uniform(kb, (fan_out,), jnp.float32, -bound, bound)
        return w, b

    w1, b1 = linear(ks[0], ks[1], EMB_DIM, HID1)
    w2, b2 = linear(ks[2], ks[3], HID1, HID2)
    w3, b3 = linear(ks[4], ks[5], HID2, OUTPUT_DIM)
    return (w1, b1, w2, b2, w3, b3)


def _reference(emb, params):
    """Plain-JAX f32 reference with exact-erf GELU (matches PyTorch nn.GELU())."""
    w1, b1, w2, b2, w3, b3 = params
    h = _gelu(emb @ w1 + b1, approximate=False)
    h = _gelu(h @ w2 + b2, approximate=False)
    out = h @ w3 + b3
    particles = out[:, :NUM_PARTICLES * PARTICLE_FEAT_DIM].reshape(
        -1, NUM_PARTICLES, PARTICLE_FEAT_DIM)
    return particles, out[:, NUM_PARTICLES * PARTICLE_FEAT_DIM:]


if __name__ == "__main__":
    key = jax.random.PRNGKey(0)
    k_emb, k_emb2, k_params = jax.random.split(key, 3)

    params = init_params(k_params)
    prepared = prepare_params(params)  # one-time: bf16 cast + layer-3 padding

    # Small batch (single grid step), f32 output.
    B = 8
    emb = jax.random.normal(k_emb, (B, EMB_DIM), jnp.float32)
    particles, global_feats = ae_decoder_forward(emb, prepared)
    jax.block_until_ready((particles, global_feats))

    ref_p, ref_g = _reference(emb, params)
    assert particles.shape == (B, NUM_PARTICLES, PARTICLE_FEAT_DIM)
    assert global_feats.shape == (B, GLOBAL_FEAT_DIM)
    # bf16 weights/activations + tanh-GELU vs f32 exact-erf reference.
    assert jnp.allclose(particles, ref_p, atol=3e-2, rtol=3e-2)
    assert jnp.allclose(global_feats, ref_g, atol=3e-2, rtol=3e-2)

    # Ragged batch exercising the multi-step grid, padding and bf16-output path.
    B2 = 300
    emb2 = jax.random.normal(k_emb2, (B2, EMB_DIM), jnp.float32)
    p2, g2 = ae_decoder_forward(emb2, prepared, tb=128, out_dtype=jnp.bfloat16)
    jax.block_until_ready((p2, g2))
    rp2, rg2 = _reference(emb2, params)
    assert p2.shape == (B2, NUM_PARTICLES, PARTICLE_FEAT_DIM)
    assert g2.shape == (B2, GLOBAL_FEAT_DIM)
    assert jnp.allclose(p2.astype(jnp.float32), rp2, atol=3e-2, rtol=3e-2)
    assert jnp.allclose(g2.astype(jnp.float32), rg2, atol=3e-2, rtol=3e-2)

    print("KERNEL_OK")
</pallas_src>

<mosaic_0001>
module attributes {stable_mosaic.version = 11 : i64} {
  func.func @ae_decoder_kernel(%arg0: i32, %arg1: memref<8x64xbf16, #tpu.memory_space<vmem>>, %arg2: memref<64x256xbf16, #tpu.memory_space<vmem>>, %arg3: memref<1x256xf32, #tpu.memory_space<vmem>>, %arg4: memref<256x128xbf16, #tpu.memory_space<vmem>>, %arg5: memref<1x128xf32, #tpu.memory_space<vmem>>, %arg6: memref<128x128xbf16, #tpu.memory_space<vmem>>, %arg7: memref<1x128xf32, #tpu.memory_space<vmem>>, %arg8: memref<8x128xf32, #tpu.memory_space<vmem>>) attributes {dimension_semantics = [#tpu.dimension_semantics<parallel>], iteration_bounds = array<i64: 1>, scalar_prefetch = 0 : i64, scratch_operands = 0 : i64, tpu.core_type = #tpu.core_type<tc>, window_params = [{transform_indices = @transform_0, window_bounds = array<i64: 8, 64>}, {pipeline_mode = #tpu.pipeline_mode<synchronous>, transform_indices = @transform_1, window_bounds = array<i64: 64, 256>}, {pipeline_mode = #tpu.pipeline_mode<synchronous>, transform_indices = @transform_2, window_bounds = array<i64: 1, 256>}, {pipeline_mode = #tpu.pipeline_mode<synchronous>, transform_indices = @transform_3, window_bounds = array<i64: 256, 128>}, {pipeline_mode = #tpu.pipeline_mode<synchronous>, transform_indices = @transform_4, window_bounds = array<i64: 1, 128>}, {pipeline_mode = #tpu.pipeline_mode<synchronous>, transform_indices = @transform_5, window_bounds = array<i64: 128, 128>}, {pipeline_mode = #tpu.pipeline_mode<synchronous>, transform_indices = @transform_6, window_bounds = array<i64: 1, 128>}, {transform_indices = @transform_7, window_bounds = array<i64: 8, 128>}]} {
    %c0 = arith.constant 0 : index
    %c0_0 = arith.constant 0 : index
    %0 = vector.load %arg1[%c0, %c0_0] : memref<8x64xbf16, #tpu.memory_space<vmem>>, vector<8x64xbf16>
    %c0_1 = arith.constant 0 : index
    %c0_2 = arith.constant 0 : index
    %1 = vector.load %arg2[%c0_1, %c0_2] : memref<64x256xbf16, #tpu.memory_space<vmem>>, vector<64x256xbf16>
    %cst = arith.constant dense<0.000000e+00> : vector<8x256xf32>
    %2 = tpu.matmul %0, %1, %cst {dimension_numbers = #tpu.dot_dimension_numbers<[1], [0], [0], [1], [0, 0, 1, 1], [], []>} : vector<8x64xbf16>, vector<64x256xbf16>, vector<8x256xf32> -> vector<8x256xf32>
    %c0_3 = arith.constant 0 : index
    %c0_4 = arith.constant 0 : index
    %3 = vector.load %arg3[%c0_3, %c0_4] : memref<1x256xf32, #tpu.memory_space<vmem>>, vector<1x256xf32>
    %4 = vector.broadcast %3 : vector<1x256xf32> to vector<8x256xf32>
    %5 = arith.addf %2, %4 : vector<8x256xf32>
    %6 = arith.mulf %5, %5 : vector<8x256xf32>
    %7 = arith.mulf %5, %6 : vector<8x256xf32>
    %cst_5 = arith.constant 4.471500e-02 : f32
    %8 = vector.broadcast %cst_5 : f32 to vector<8x256xf32>
    %9 = arith.mulf %8, %7 : vector<8x256xf32>
    %10 = arith.addf %5, %9 : vector<8x256xf32>
    %cst_6 = arith.constant 0.797884583 : f32
    %11 = vector.broadcast %cst_6 : f32 to vector<8x256xf32>
    %12 = arith.mulf %11, %10 : vector<8x256xf32>
    %13 = math.tanh %12 : vector<8x256xf32>
    %cst_7 = arith.constant 1.000000e+00 : f32
    %14 = vector.broadcast %cst_7 : f32 to vector<8x256xf32>
    %15 = arith.addf %14, %13 : vector<8x256xf32>
    %cst_8 = arith.constant 5.000000e-01 : f32
    %16 = vector.broadcast %cst_8 : f32 to vector<8x256xf32>
    %17 = arith.mulf %16, %15 : vector<8x256xf32>
    %18 = arith.mulf %5, %17 : vector<8x256xf32>
    %19 = arith.truncf %18 : vector<8x256xf32> to vector<8x256xbf16>
    %c0_9 = arith.constant 0 : index
    %c0_10 = arith.constant 0 : index
    %20 = vector.load %arg4[%c0_9, %c0_10] : memref<256x128xbf16, #tpu.memory_space<vmem>>, vector<256x128xbf16>
    %cst_11 = arith.constant dense<0.000000e+00> : vector<8x128xf32>
    %21 = tpu.matmul %19, %20, %cst_11 {dimension_numbers = #tpu.dot_dimension_numbers<[1], [0], [0], [1], [0, 0, 1, 1], [], []>} : vector<8x256xbf16>, vector<256x128xbf16>, vector<8x128xf32> -> vector<8x128xf32>
    %c0_12 = arith.constant 0 : index
    %c0_13 = arith.constant 0 : index
    %22 = vector.load %arg5[%c0_12, %c0_13] : memref<1x128xf32, #tpu.memory_space<vmem>>, vector<1x128xf32>
    %23 = vector.broadcast %22 : vector<1x128xf32> to vector<8x128xf32>
    %24 = arith.addf %21, %23 : vector<8x128xf32>
    %25 = arith.mulf %24, %24 : vector<8x128xf32>
    %26 = arith.mulf %24, %25 : vector<8x128xf32>
    %cst_14 = arith.constant 4.471500e-02 : f32
    %27 = vector.broadcast %cst_14 : f32 to vector<8x128xf32>
    %28 = arith.mulf %27, %26 : vector<8x128xf32>
    %29 = arith.addf %24, %28 : vector<8x128xf32>
    %cst_15 = arith.constant 0.797884583 : f32
    %30 = vector.broadcast %cst_15 : f32 to vector<8x128xf32>
    %31 = arith.mulf %30, %29 : vector<8x128xf32>
    %32 = math.tanh %31 : vector<8x128xf32>
    %cst_16 = arith.constant 1.000000e+00 : f32
    %33 = vector.broadcast %cst_16 : f32 to vector<8x128xf32>
    %34 = arith.addf %33, %32 : vector<8x128xf32>
    %cst_17 = arith.constant 5.000000e-01 : f32
    %35 = vector.broadcast %cst_17 : f32 to vector<8x128xf32>
    %36 = arith.mulf %35, %34 : vector<8x128xf32>
    %37 = arith.mulf %24, %36 : vector<8x128xf32>
    %38 = arith.truncf %37 : vector<8x128xf32> to vector<8x128xbf16>
    %c0_18 = arith.constant 0 : index
    %c0_19 = arith.constant 0 : index
    %39 = vector.load %arg6[%c0_18, %c0_19] : memref<128x128xbf16, #tpu.memory_space<vmem>>, vector<128x128xbf16>
    %cst_20 = arith.constant dense<0.000000e+00> : vector<8x128xf32>
    %40 = tpu.matmul %38, %39, %cst_20 {dimension_numbers = #tpu.dot_dimension_numbers<[1], [0], [0], [1], [0, 0, 1, 1], [], []>} : vector<8x128xbf16>, vector<128x128xbf16>, vector<8x128xf32> -> vector<8x128xf32>
    %c0_21 = arith.constant 0 : index
    %c0_22 = arith.constant 0 : index
    %41 = vector.load %arg7[%c0_21, %c0_22] : memref<1x128xf32, #tpu.memory_space<vmem>>, vector<1x128xf32>
    %42 = vector.broadcast %41 : vector<1x128xf32> to vector<8x128xf32>
    %43 = arith.addf %40, %42 : vector<8x128xf32>
    %c0_23 = arith.constant 0 : index
    %c0_24 = arith.constant 0 : index
    %44 = vector.load %arg8[%c0_23, %c0_24] : memref<8x128xf32, #tpu.memory_space<vmem>>, vector<8x128xf32>
    tpu.vector_store %arg8[%c0_23, %c0_24], %43 {strides = array<i32>} : memref<8x128xf32, #tpu.memory_space<vmem>>, vector<8x128xf32>,
    return
  }
  func.func @transform_0(%arg0: i32) -> (i32, i32) {
    %c0_i32 = arith.constant 0 : i32
    %c0_i32_0 = arith.constant 0 : i32
    return %arg0, %c0_i32 : i32, i32
  }
  func.func @transform_1(%arg0: i32) -> (i32, i32) {
    %c0_i32 = arith.constant 0 : i32
    %c0_i32_0 = arith.constant 0 : i32
    %c0_i32_1 = arith.constant 0 : i32
    return %c0_i32, %c0_i32_0 : i32, i32
  }
  func.func @transform_2(%arg0: i32) -> (i32, i32) {
    %c0_i32 = arith.constant 0 : i32
    %c0_i32_0 = arith.constant 0 : i32
    %c0_i32_1 = arith.constant 0 : i32
    return %c0_i32, %c0_i32_0 : i32, i32
  }
  func.func @transform_3(%arg0: i32) -> (i32, i32) {
    %c0_i32 = arith.constant 0 : i32
    %c0_i32_0 = arith.constant 0 : i32
    %c0_i32_1 = arith.constant 0 : i32
    return %c0_i32, %c0_i32_0 : i32, i32
  }
  func.func @transform_4(%arg0: i32) -> (i32, i32) {
    %c0_i32 = arith.constant 0 : i32
    %c0_i32_0 = arith.constant 0 : i32
    %c0_i32_1 = arith.constant 0 : i32
    return %c0_i32, %c0_i32_0 : i32, i32
  }
  func.func @transform_5(%arg0: i32) -> (i32, i32) {
    %c0_i32 = arith.constant 0 : i32
    %c0_i32_0 = arith.constant 0 : i32
    %c0_i32_1 = arith.constant 0 : i32
    return %c0_i32, %c0_i32_0 : i32, i32
  }
  func.func @transform_6(%arg0: i32) -> (i32, i32) {
    %c0_i32 = arith.constant 0 : i32
    %c0_i32_0 = arith.constant 0 : i32
    %c0_i32_1 = arith.constant 0 : i32
    return %c0_i32, %c0_i32_0 : i32, i32
  }
  func.func @transform_7(%arg0: i32) -> (i32, i32) {
    %c0_i32 = arith.constant 0 : i32
    %c0_i32_0 = arith.constant 0 : i32
    return %arg0, %c0_i32 : i32, i32
  }
}

</mosaic_0001>

<bundles_post_ra>
// kernel: ae_decoder_forward_flat.1
= control target key start
LH: loop header
LB: loop body
LE: loop exit
PB: predicated region body
PF: predicated region fallthrough
CT: control target
= control target key end

     0   :  { %12 = vsyncpa [#allocation3], 0  ;;  %s858_s0 = inlined_call_operand.vmem [shape: bf16[8,64], index: 0, kind: input, shape index: {}]   ;;  %s859_s1 = inlined_call_operand.hbm [shape: bf16[64,256], index: 1, kind: input, shape index: {}]   ;;  %s860_s2 = inlined_call_operand.vmem [shape: f32[1,256], index: 2, kind: input, shape index: {}]   ;;  %s861_s3 = inlined_call_operand.hbm [shape: bf16[256,128], index: 3, kind: input, shape index: {}]   ;;  %s862_s4 = inlined_call_operand.vmem [shape: f32[1,128], index: 4, kind: input, shape index: {}]   ;;  %s863_s5 = inlined_call_operand.hbm [shape: bf16[128,128], index: 5, kind: input, shape index: {}]   ;;  %s864_s6 = inlined_call_operand.vmem [shape: f32[1,128], index: 6, kind: input, shape index: {}]   ;;  %s865_s7 = inlined_call_operand.hbm [shape: f32[8,128], index: 7, kind: output, shape index: {}]  }
   0x1   :  { %13 = vsyncpa [#allocation6], 0 }
   0x2   :  { %14 = vsyncpa [#allocation4], 0  ;;  %s741_s24 = smov [#allocation5]   ;;  %s647_s28 = scalar_lea.hbm %s861_s3, 2048 }
   0x3   :  { %s36_s25 = sshll.u32 %s741_s24, 4  ;;  %p648_p0 = scmp.ne.s32.totalorder %s861_s3, %s647_s28  ;;  %s37_s25 = int_to_ptr.vmem [resolvable:$true] %s36_s25 }
   0x4   :  { %p651_p1 = scmp.lt.u32.totalorder %s647_s28, %s861_s3 }
   0x6   :  { %p653_p2 = pnand %p651_p1, %p648_p0 }
   0x8   :  { %656 = shalt.err (!%p653_p2)
}
   0x9   :  { %s657_s10 = scalar_lea.vmem %s37_s25, 2048  ;;  %p662_p4 = scmp.lt.s32.totalorder %s37_s25, %s37_s25 }
   0xa   :  { %p658_p3 = scmp.ne.s32.totalorder %s37_s25, %s657_s10  ;;  %p663_p5 = scmp.lt.s32.totalorder %s657_s10, %s657_s10 }
   0xc   :  { %p664_p6 = por %p663_p5, %p662_p4 }
   0xe   :  { %p665_p7 = pnand %p664_p6, %p658_p3 }
  0x10   :  { %668 = shalt.err (!%p665_p7)
}
  0x11   :  { %s742_s11 = smov 64   ;;  %s743_s12 = smov 4  }
  0x12   :  { %42 = dma.hbm_to_vmem [thread:$0]  %s861_s3, 2048, %s37_s25, [#allocation6], %s742_s11, %s742_s11, %s743_s12  }
  0x13   :  { %s744_s15 = smov [#allocation2]   ;;  %s669_s19 = scalar_lea.hbm %s859_s1, 1024 }
  0x14   :  { %s22_s16 = sshll.u32 %s744_s15, 4  ;;  %p670_p8 = scmp.ne.s32.totalorder %s859_s1, %s669_s19  ;;  %s23_s16 = int_to_ptr.vmem [resolvable:$true] %s22_s16 }
  0x15   :  { %p673_p9 = scmp.lt.u32.totalorder %s669_s19, %s859_s1 }
  0x17   :  { %p675_p10 = pnand %p673_p9, %p670_p8 }
  0x19   :  { %678 = shalt.err (!%p675_p10)
}
  0x1a   :  { %s679_s24 = scalar_lea.vmem %s23_s16, 1024  ;;  %p684_p12 = scmp.lt.s32.totalorder %s23_s16, %s23_s16 }
  0x1b   :  { %p680_p11 = scmp.ne.s32.totalorder %s23_s16, %s679_s24  ;;  %p685_p13 = scmp.lt.s32.totalorder %s679_s24, %s679_s24 }
  0x1d   :  { %p686_p0 = por %p685_p13, %p684_p12 }
  0x1f   :  { %p687_p1 = pnand %p686_p0, %p680_p11 }
  0x21   :  { %690 = shalt.err (!%p687_p1)
}
  0x22   :  { %s745_s3 = smov 128   ;;  %s746_s25 = smov 8  }
  0x23   :  { %28 = dma.hbm_to_vmem [thread:$0]  %s859_s1, 1024, %s23_s16, [#allocation3], %s745_s3, %s745_s3, %s746_s25  }
  0x24   :  { %s747_s28 = smov [#allocation7]   ;;  %s691_s9 = scalar_lea.hbm %s863_s5, 1024 }
  0x25   :  { %s50_s29 = sshll.u32 %s747_s28, 4  ;;  %p692_p2 = scmp.ne.s32.totalorder %s863_s5, %s691_s9  ;;  %s51_s29 = int_to_ptr.vmem [resolvable:$true] %s50_s29 }
  0x26   :  { %p695_p3 = scmp.lt.u32.totalorder %s691_s9, %s863_s5 }
  0x28   :  { %p697_p4 = pnand %p695_p3, %p692_p2 }
  0x2a   :  { %700 = shalt.err (!%p697_p4)
}
  0x2b   :  { %s701_s17 = scalar_lea.vmem %s51_s29, 1024  ;;  %p706_p6 = scmp.lt.s32.totalorder %s51_s29, %s51_s29 }
  0x2c   :  { %p702_p5 = scmp.ne.s32.totalorder %s51_s29, %s701_s17  ;;  %p707_p7 = scmp.lt.s32.totalorder %s701_s17, %s701_s17 }
  0x2e   :  { %p708_p8 = por %p707_p7, %p706_p6 }
  0x30   :  { %p709_p9 = pnand %p708_p8, %p702_p5 }
  0x32   :  { %712 = shalt.err (!%p709_p9)
}
  0x33   :  { %56 = dma.hbm_to_vmem [thread:$0]  %s863_s5, 1024, %s51_s29, [#allocation6], %s742_s11, %s742_s11, %s743_s12  }
  0x34   :  { %735 = dma.done.wait [#allocation3], 1024  }
  0x35   :  { %736 = vsyncadd [#allocation3], 4294966272 }
  0x36   :  { %737 = dma.done.wait [#allocation6], 3072  }
  0x37   :  { %738 = vsyncadd [#allocation6], 4294964224  ;;  %v748_v0 = vmov 0   ;;  %v605_v1 = vld [vmem:[#allocation2 + $0x4] ss:$8 sps:$4 sm:$0xff]   ;;  %vm130_vm0 = vcmask 523264   ;;  %v80_v26 = vlaneseq }
  0x38   :  { %166 = vmatprep.mubr.bf16.mxu0 %v748_v0  ;;  %v607_v2 = vld [vmem:[#allocation2] ss:$8 sps:$4 sm:$0xff]   ;;  %134 = vmatprep.subr.bf16.mxu0 %v605_v1  ;;  %v608_v3 = vld [vmem:[#allocation2 + $0x14] ss:$8 sps:$4 sm:$0xff]   ;;  %v610_v4 = vld [vmem:[#allocation2 + $0x10] ss:$8 sps:$4 sm:$0xff]  }
  0x39   :  { %135 = vmatpush1.bf16.msra.mxu0 %v607_v2  ;;  %v611_v5 = vld [vmem:[#allocation2 + $0x24] ss:$8 sps:$4 sm:$0xff]   ;;  %v613_v6 = vld [vmem:[#allocation2 + $0x20] ss:$8 sps:$4 sm:$0xff]   ;;  %v614_v7 = vld [vmem:[#allocation2 + $0x34] ss:$8 sps:$4 sm:$0xff]  }
  0x3a   :  { %136 = vmatprep.subr.bf16.mxu0 %v608_v3  ;;  %v616_v8 = vld [vmem:[#allocation2 + $0x30] ss:$8 sps:$4 sm:$0xff]   ;;  %v69_v9 = vld [vmem:[%s858_s0] sm:$0xf]  ;;  %v619_v12 = vld [vmem:[#allocation5 + $0x48] sm:$0xff]   ;;  %v81_v27 = vshrl.u32 %v80_v26, 7 }
  0x3b   :  { %v617_v10 = vld [vmem:[#allocation5 + $0x40] sm:$0xff]   ;;  %v620_v13 = vld [vmem:[#allocation5 + $0x8] sm:$0xff]   ;;  %v621_v14 = vld [vmem:[#allocation5 + $0x50] sm:$0xff]   ;;  %v749_v60 = vmov 0.0   ;;  %vm750_vm1 = vmmov 0  }
  0x3c   :  { %v618_v11 = vld [vmem:[#allocation5] sm:$0xff]   ;;  %543 = vmatprep.subr.bf16.mxu1 %v617_v10  ;;  %v622_v15 = vld [vmem:[#allocation5 + $0x10] sm:$0xff]   ;;  %v623_v16 = vld [vmem:[#allocation5 + $0x58] sm:$0xff]   ;;  %v82_v28 = vsub.s32 0, %v81_v27  ;;  %v86_v30 = vsub.s32 1, %v81_v27 }
  0x3d   :  { %137 = vmatpush1.bf16.msra.mxu0 %v610_v4  ;;  %544 = vmatpush3.bf16.msra.mxu1 %v618_v11  ;;  %v624_v17 = vld [vmem:[#allocation5 + $0x18] sm:$0xff]   ;;  %v625_v18 = vld [vmem:[#allocation5 + $0x60] sm:$0xff]   ;;  %v627_v20 = vld [vmem:[#allocation5 + $0x68] sm:$0xff]  }
  0x3e   :  { %138 = vmatprep.subr.bf16.mxu0 %v611_v5  ;;  %545 = vmatprep.subr.bf16.mxu1 %v619_v12  ;;  %v626_v19 = vld [vmem:[#allocation5 + $0x20] sm:$0xff]   ;;  %v628_v21 = vld [vmem:[#allocation5 + $0x28] sm:$0xff]   ;;  %v629_v22 = vld [vmem:[#allocation5 + $0x70] sm:$0xff]  }
  0x3f   :  { %v630_v23 = vld [vmem:[#allocation5 + $0x30] sm:$0xff]   ;;  %v631_v24 = vld [vmem:[#allocation5 + $0x78] sm:$0xff]   ;;  %v78_v29 = vld [vmem:[%s860_s2] sm:$0x3] }
  0x40   :  { %v632_v25 = vld [vmem:[#allocation5 + $0x38] sm:$0xff]   ;;  %v83_v31 = vrot.slane %v78_v29, %v82_v28  ;;  %v87_v32 = vrot.slane %v78_v29, %v86_v30  ;;  %v633_v59 = vld [vmem:[#allocation7] sm:$0xff]   ;;  %v634_v61 = vld [vmem:[#allocation7 + $0x8] sm:$0xff]  }
  0x41   :  { %139 = vmatpush1.bf16.msra.mxu0 %v613_v6  ;;  %546 = vmatpush3.bf16.msra.mxu1 %v620_v13  ;;  %v635_v62 = vld [vmem:[#allocation7 + $0x10] sm:$0xff]   ;;  %v636_v63 = vld [vmem:[#allocation7 + $0x18] sm:$0xff]   ;;  %v637_v0 = vld [vmem:[#allocation7 + $0x20] sm:$0xff]  }
  0x42   :  { %140 = vmatprep.subr.bf16.mxu0 %v614_v7  ;;  %547 = vmatprep.subr.bf16.mxu1 %v621_v14  ;;  %v638_v1 = vld [vmem:[#allocation7 + $0x28] sm:$0xff]   ;;  %v639_v2 = vld [vmem:[#allocation7 + $0x30] sm:$0xff]   ;;  %v640_v3 = vld [vmem:[#allocation7 + $0x38] sm:$0xff]  }
  0x43   :  { %v517_v5 = vld [vmem:[%s862_s4] ss:$0 sm:$0xff]  ;;  %s751_s4 = smov [#allocation8]  }
  0x44   :  { %s498_s21 = sshll.u32 %s751_s4, 4  ;;  %s499_s21 = int_to_ptr.vmem [resolvable:$true] %s498_s21 }
  0x45   :  { %141 = vmatpush1.bf16.msra.mxu0 %v616_v8  ;;  %548 = vmatpush3.bf16.msra.mxu1 %v622_v15  ;;  %s713_s22 = scalar_lea.vmem %s499_s21, 128  ;;  %p718_p11 = scmp.lt.s32.totalorder %s499_s21, %s499_s21 }
  0x46   :  { %549 = vmatprep.subr.bf16.mxu1 %v623_v16  ;;  %574 = vmatprep.subr.bf16.mxu0 %v749_v60  ;;  %p714_p10 = scmp.ne.s32.totalorder %s499_s21, %s713_s22  ;;  %p719_p12 = scmp.lt.s32.totalorder %s713_s22, %s713_s22 }
  0x48   :  { %516 = vmatmul.mubr.msk.bf16.vlgmr.msra.gmra.mrb[0].mxu0 %vm130_vm0, %v69_v9  ;;  %p720_p13 = por %p719_p12, %p718_p11 }
  0x49   :  { %550 = vmatpush3.bf16.msra.mxu1 %v624_v17  ;;  %575 = vmatpush3.bf16.msra.mxu0 %v633_v59 }
  0x4a   :  { %551 = vmatprep.subr.bf16.mxu1 %v625_v18  ;;  %576 = vmatprep.subr.bf16.mxu0 %v749_v60  ;;  %p721_p0 = pnand %p720_p13, %p714_p10 }
  0x4b   :  { %590 = vmatprep.mubr.msk.bf16.mxu0 %vm750_vm1, %v749_v60 }
  0x4d   :  { %552 = vmatpush3.bf16.msra.mxu1 %v626_v19  ;;  %577 = vmatpush3.bf16.msra.mxu0 %v634_v61 }
  0x4e   :  { %553 = vmatprep.subr.bf16.mxu1 %v627_v20  ;;  %578 = vmatprep.subr.bf16.mxu0 %v749_v60 }
  0x51   :  { %554 = vmatpush3.bf16.msra.mxu1 %v628_v21  ;;  %579 = vmatpush3.bf16.msra.mxu0 %v635_v62  ;;  %v534_v21 = vld [vmem:[%s864_s6] ss:$0 sm:$0xff] }
  0x52   :  { %555 = vmatprep.subr.bf16.mxu1 %v629_v22  ;;  %580 = vmatprep.subr.bf16.mxu0 %v749_v60 }
  0x55   :  { %556 = vmatpush3.bf16.msra.mxu1 %v630_v23  ;;  %581 = vmatpush3.bf16.msra.mxu0 %v636_v63 }
  0x56   :  { %557 = vmatprep.subr.bf16.mxu1 %v631_v24  ;;  %582 = vmatprep.subr.bf16.mxu0 %v749_v60 }
  0x59   :  { %558 = vmatpush3.bf16.msra.mxu1 %v632_v25  ;;  %583 = vmatpush3.bf16.msra.mxu0 %v637_v0 }
  0x5a   :  { %584 = vmatprep.subr.bf16.mxu0 %v749_v60 }
  0x5d   :  { %585 = vmatpush3.bf16.msra.mxu0 %v638_v1 }
  0x5e   :  { %586 = vmatprep.subr.bf16.mxu0 %v749_v60 }
  0x61   :  { %587 = vmatpush3.bf16.msra.mxu0 %v639_v2 }
  0x62   :  { %588 = vmatprep.subr.bf16.mxu0 %v749_v60 }
  0x65   :  { %589 = vmatpush3.bf16.msra.mxu0 %v640_v3 }
 0x11b   :  { %v168_v33 = vpop.f32.mrb[0].mxu0 }
 0x11c   :  { %v169_v34 = vadd.f32 %v168_v33, %v83_v31  ;;  %v170_v35 = vpop.f32.mrb[1].mxu0 }
 0x11d   :  { %v171_v36 = vadd.f32 %v170_v35, %v87_v32  ;;  %v172_v37 = vpop.f32.mrb[2].mxu0 }
 0x11e   :  { %v175_v38 = vmul.f32 %v169_v34, %v169_v34  ;;  %v173_v39 = vpop.f32.mrb[3].mxu0 }
 0x11f   :  { %v176_v40 = vmul.f32 %v171_v36, %v171_v36 }
 0x120   :  { %v177_v41 = vmul.f32 %v175_v38, %v169_v34 }
 0x121   :  { %v178_v42 = vmul.f32 %v176_v40, %v171_v36 }
 0x122   :  { %v179_v43 = vmul.f32 0.044715, %v177_v41 }
 0x123   :  { %v180_v44 = vmul.f32 0.044715, %v178_v42 }
 0x124   :  { %v181_v45 = vadd.f32 %v179_v43, %v169_v34 }
 0x125   :  { %v182_v46 = vadd.f32 %v180_v44, %v171_v36 }
 0x126   :  { %v183_v47 = vmul.f32 0.7978846, %v181_v45 }
 0x127   :  { %v184_v48 = vmul.f32 0.7978846, %v182_v46 }
 0x128   :  { %641 = vtanh.f32 %v183_v47 }
 0x129   :  { %643 = vtanh.f32 %v184_v48 }
 0x132   :  { %v642_v49 = vpop.eup %641 }
 0x133   :  { %v644_v50 = vpop.eup %643  ;;  %v187_v51 = vadd.f32 1.0, %v642_v49 }
 0x134   :  { %v188_v52 = vadd.f32 1.0, %v644_v50 }
 0x135   :  { %v189_v53 = vmul.f32 0.5, %v187_v51 }
 0x136   :  { %v190_v54 = vmul.f32 0.5, %v188_v52 }
 0x137   :  { %v191_v55 = vmul.f32 %v189_v53, %v169_v34 }
 0x138   :  { %v192_v56 = vmul.f32 %v190_v54, %v171_v36 }
 0x139   :  { %v193_v58 = vpack.c.bf16 %v191_v55, %v191_v55 }
 0x13a   :  { %v194_v57 = vpack.c.bf16 %v192_v56, %v192_v56 }
 0x13c   :  { %362 = vmatprep.mubr.bf16.mxu1 %v194_v57 }
 0x13d   :  { %363 = vmatmul.mubr.bf16.vlgmr.msra.gmra.mrb[0].mxu1 %v193_v58 }
 0x210   :  { %v559_v4 = vpop.f32.mrb[0].mxu1 }
 0x211   :  { %v560_v6 = vpop.f32.mrb[1].mxu1 }
 0x212   :  { %v561_v7 = vadd.f32 %v560_v6, %v559_v4  ;;  %v562_v8 = vpop.f32.mrb[2].mxu1 }
 0x213   :  { %v563_v9 = vpop.f32.mrb[3].mxu1 }
 0x214   :  { %v365_v10 = vadd.f32 %v561_v7, %v517_v5 }
 0x216   :  { %v370_v11 = vmul.f32 %v365_v10, %v365_v10 }
 0x218   :  { %v371_v12 = vmul.f32 %v370_v11, %v365_v10 }
 0x21a   :  { %v372_v13 = vmul.f32 0.044715, %v371_v12 }
 0x21c   :  { %v373_v14 = vadd.f32 %v372_v13, %v365_v10 }
 0x21e   :  { %v374_v15 = vmul.f32 0.7978846, %v373_v14 }
 0x220   :  { %645 = vtanh.f32 %v374_v15 }
 0x22a   :  { %v646_v16 = vpop.eup %645 }
 0x22b   :  { %v376_v17 = vadd.f32 1.0, %v646_v16 }
 0x22d   :  { %v377_v18 = vmul.f32 0.5, %v376_v17 }
 0x22f   :  { %v378_v19 = vmul.f32 %v377_v18, %v365_v10 }
 0x231   :  { %v379_v20 = vpack.c.bf16 %v378_v19, %v378_v19 }
 0x233   :  { %591 = vmatmul.mubr.bf16.vlgmr.msra.gmra.mrb[4].mxu0 %v379_v20 }
 0x306   :  { %v485_v22 = vpop.f32.mrb[4].mxu0 }
 0x307   :  { %v486_v23 = vadd.f32 %v534_v21, %v485_v22  ;;  %v592_v24 = vpop.f32.mrb[5].mxu0 }
 0x308   :  { %v488_v25 = vpop.f32.mrb[6].mxu0 }
 0x309   :  { %491 = vst [vmem:[#allocation8] sm:$0xff] %v486_v23  ;;  %v593_v26 = vpop.f32.mrb[7].mxu0 }
 0x30a   :  { %724 = shalt.err (!%p721_p0)
}
 0x30b   :  { %s725_s6 = scalar_lea.hbm %s865_s7, 128 }
 0x30c   :  { %p726_p1 = scmp.ne.s32.totalorder %s865_s7, %s725_s6  ;;  %p729_p2 = scmp.lt.u32.totalorder %s725_s6, %s865_s7 }
 0x30e   :  { %p731_p3 = pnand %p729_p2, %p726_p1 }
 0x310   :  { %734 = shalt.err (!%p731_p3)
}
 0x311   :  { %501 = dma.vmem_to_hbm [thread:$0]  %s499_s21, 128, %s865_s7, [#allocation4]  }
 0x312   :  { %739 = dma.done.wait [#allocation4], 128  }
 0x313   :  { %740 = vsyncadd [#allocation4], 4294967168 }
 0x314   :  { %505 = vsyncpa [#allocation3], 1 }
 0x315   :  { %506 = vsyncpa [#allocation6], 1 }
 0x316   :  { %507 = vsyncpa [#allocation4], 1 }

</bundles_post_ra>
